<compile_context>
chip_gen: v5e
topology: v5e:2x2
jax: 0.10.0
libtpu: 0.0.40
codegen_flags: <defaults>
</compile_context>

<pallas_src>
import functools
import math

import jax
import jax.numpy as jnp
from jax import lax
from jax.experimental import pallas as pl
from jax.experimental.pallas import tpu as pltpu


def _tap(x, offset, axis):
    """Face-neighbor value at `offset` along `axis`: out[i] = x[i + offset].

    Implemented as a static XLU rotate (pltpu.roll semantics match jnp.roll:
    roll(x, s)[i] = x[i - s]).  Every wrapped position is masked by the
    caller, so wrapped values never win the min.
    """
    n = x.shape[axis]
    s = (-offset) % n
    if s == 0:
        return x
    return pltpu.roll(x, s, axis=axis)


def erosion_kernel(x_ref, o_ref, *, D, W):
    # Block shape: (rows, L) with rows a multiple of D and L == H * W(_padded).
    # Row r encodes (volume, d) with d = r % D (every block starts on a volume
    # boundary); lane l encodes (h, w) with h = l // W, w = l % W.
    x = x_ref[...]
    rows, L = x.shape
    inf = jnp.asarray(jnp.inf, dtype=x.dtype)

    # Small boundary predicates, built once from iotas: (1, L) for the W/H
    # axes, (rows, 1) for the D axis.  They broadcast into the selects below.
    lane = lax.broadcasted_iota(jnp.int32, (1, L), 1)
    w = lane % W
    d = lax.broadcasted_iota(jnp.int32, (rows, 1), 0) % D

    # Six face-neighbor taps as XLU rotates; out-of-volume neighbors are
    # replaced by +inf (select, not add, so garbage / +-inf taps can't leak
    # NaN into valid outputs).  D-axis rotates only mix volumes at positions
    # that are masked anyway (rows is a multiple of D).
    t_wp = jnp.where(w == W - 1, inf, _tap(x, +1, 1))    # neighbor (d, h, w+1)
    t_wm = jnp.where(w == 0, inf, _tap(x, -1, 1))        # neighbor (d, h, w-1)
    t_hp = jnp.where(lane >= L - W, inf, _tap(x, +W, 1))  # neighbor (d, h+1, w)
    t_hm = jnp.where(lane < W, inf, _tap(x, -W, 1))       # neighbor (d, h-1, w)
    t_dp = jnp.where(d == D - 1, inf, _tap(x, +1, 0))    # neighbor (d+1, h, w)
    t_dm = jnp.where(d == 0, inf, _tap(x, -1, 0))        # neighbor (d-1, h, w)

    # Balanced 7-way min (depth 3) instead of a serial chain.
    o_ref[...] = jnp.minimum(
        jnp.minimum(jnp.minimum(t_wp, t_wm), jnp.minimum(t_hp, t_hm)),
        jnp.minimum(jnp.minimum(t_dp, t_dm), x),
    )


def erosion(x, *, max_block_bytes=2 << 20, min_grid_steps=8):
    """x: (N, C, D, H, W) floating array -> same shape/dtype (7-point min)."""
    if not jnp.issubdtype(x.dtype, jnp.floating):
        raise ValueError("erosion expects a floating dtype (uses +inf padding)")
    N, C, D, H, W = x.shape
    itemsize = x.dtype.itemsize

    # Lane-density guard: the slab's last dim (H*W) should be a multiple of
    # 128 so output stores are unmasked full-lane vst.  Pad W with +inf (it
    # never wins the min) and slice it off afterwards.
    if (H * W) % 128 != 0:
        step = 128 // math.gcd(H, 128)
        W_pad = -(-W // step) * step
        x_work = jnp.pad(
            x, [(0, 0)] * 4 + [(0, W_pad - W)], constant_values=jnp.inf
        )
    else:
        W_pad = W
        x_work = x
    L = H * W_pad

    V = N * C                       # independent volumes
    R = V * D                       # rows of the flattened slab
    x2 = x_work.reshape(R, L)       # free row-major collapse

    # Dtype-aware sublane tile (f32: 8, bf16/f16: 16, 8-bit: 32); g is the
    # fewest whole volumes giving a sublane-aligned block.
    sublanes = 8 * max(1, 4 // itemsize)
    g = sublanes // math.gcd(D, sublanes)
    vol_bytes = D * L * itemsize

    if V <= g:
        vols_per_block = V          # single block == full slab (always legal)
    else:
        by_budget = max(1, max_block_bytes // vol_bytes)
        by_steps = -(-V // min_grid_steps)      # keep >= ~min_grid_steps blocks
        vols_per_block = max(1, min(by_budget, by_steps))
        vols_per_block = max(g, (vols_per_block // g) * g)
        # Clamping to V either keeps a multiple of g (aligned tile) or makes
        # the block the whole slab; both are legal block shapes.
        vols_per_block = min(vols_per_block, V)
    block_rows = vols_per_block * D
    assert block_rows % D == 0      # every block starts on a volume boundary
    grid = (pl.cdiv(V, vols_per_block),)

    # Scoped-VMEM budget: double-buffered in+out blocks plus in-kernel roll
    # temporaries, capped at 48 MiB so it also fits v7x's 64 MiB physical VMEM
    # (defaults are 16 MiB on v5e, 32 MiB on v6e/v7x).
    block_bytes = block_rows * L * itemsize
    vmem_limit = int(min(48 << 20, max(32 << 20, 6 * block_bytes + (4 << 20))))
    # TODO(synk): volumes with D*H*W*itemsize >> 4 MiB still force one whole
    # volume per block; add halo-tiled D blocking before using such shapes.

    kernel = functools.partial(erosion_kernel, D=D, W=W_pad)
    out2 = pl.pallas_call(
        kernel,
        out_shape=jax.ShapeDtypeStruct((R, L), x.dtype),
        grid=grid,
        in_specs=[pl.BlockSpec((block_rows, L), lambda i: (i, 0))],
        out_specs=pl.BlockSpec((block_rows, L), lambda i: (i, 0)),
        compiler_params=pltpu.CompilerParams(
            dimension_semantics=("parallel",),
            vmem_limit_bytes=vmem_limit,
        ),
    )(x2)

    out = out2.reshape(N, C, D, H, W_pad)
    if W_pad != W:
        out = out[..., :W]
    return out


def erosion_ref(x):
    """Pure-JAX reference matching the PyTorch Erosion.forward semantics."""
    def minpool(x, axis):
        n = x.shape[axis]
        pad = [(0, 0)] * x.ndim
        pad[axis] = (1, 1)
        xp = jnp.pad(x, pad, constant_values=jnp.inf)
        s0 = lax.slice_in_dim(xp, 0, n, axis=axis)
        s1 = lax.slice_in_dim(xp, 1, n + 1, axis=axis)
        s2 = lax.slice_in_dim(xp, 2, n + 2, axis=axis)
        return jnp.minimum(jnp.minimum(s0, s1), s2)

    x1 = minpool(x, 2)
    x2 = minpool(x, 3)
    x3 = minpool(x, 4)
    return jnp.minimum(jnp.minimum(x1, x2), x3)


if __name__ == "__main__":
    key = jax.random.PRNGKey(0)
    # Small shape consistent with a 3-D voxel volume: (N, C, D, H, W)
    x = jax.random.normal(key, (2, 3, 8, 16, 16), dtype=jnp.float32)

    out = jax.block_until_ready(erosion(x))
    ref = jax.block_until_ready(erosion_ref(x))

    assert out.shape == x.shape and out.dtype == x.dtype
    assert jnp.array_equal(out, ref), "mismatch vs reference"

    print("KERNEL_OK")
</pallas_src>

<mosaic_0001>
module attributes {stable_mosaic.version = 11 : i64} {
  func.func @erosion_kernel(%arg0: i32, %arg1: memref<8x256xf32, #tpu.memory_space<vmem>>, %arg2: memref<8x256xf32, #tpu.memory_space<vmem>>) attributes {dimension_semantics = [#tpu.dimension_semantics<parallel>], iteration_bounds = array<i64: 6>, scalar_prefetch = 0 : i64, scratch_operands = 0 : i64, tpu.core_type = #tpu.core_type<tc>, window_params = [{transform_indices = @transform_0, window_bounds = array<i64: 8, 256>}, {transform_indices = @transform_1, window_bounds = array<i64: 8, 256>}]} {
    %c0 = arith.constant 0 : index
    %c0_0 = arith.constant 0 : index
    %0 = vector.load %arg1[%c0, %c0_0] : memref<8x256xf32, #tpu.memory_space<vmem>>, vector<8x256xf32>
    %1 = tpu.iota {dimensions = array<i32: 1>} : vector<1x256xi32>
    %c16_i32 = arith.constant 16 : i32
    %c0_i32 = arith.constant 0 : i32
    %2 = arith.cmpi eq, %c16_i32, %c0_i32 : i32
    %c1_i32 = arith.constant 1 : i32
    %3 = arith.select %2, %c1_i32, %c16_i32 : i32
    %4 = vector.broadcast %3 : i32 to vector<1x256xi32>
    %5 = arith.remsi %1, %4 : vector<1x256xi32>
    %c0_i32_1 = arith.constant 0 : i32
    %6 = vector.broadcast %c0_i32_1 : i32 to vector<1x256xi32>
    %7 = arith.cmpi ne, %5, %6 : vector<1x256xi32>
    %c0_i32_2 = arith.constant 0 : i32
    %8 = vector.broadcast %c0_i32_2 : i32 to vector<1x256xi32>
    %9 = arith.cmpi slt, %5, %8 : vector<1x256xi32>
    %c0_i32_3 = arith.constant 0 : i32
    %10 = arith.cmpi slt, %3, %c0_i32_3 : i32
    %11 = vector.broadcast %10 : i1 to vector<1x256xi1>
    %12 = vector.broadcast %11 : vector<1x256xi1> to vector<1x256xi1>
    %13 = arith.xori %9, %12 : vector<1x256xi1>
    %14 = arith.andi %13, %7 : vector<1x256xi1>
    %15 = vector.broadcast %3 : i32 to vector<1x256xi32>
    %16 = arith.addi %5, %15 : vector<1x256xi32>
    %17 = arith.select %14, %16, %5 : vector<1x256xi1>, vector<1x256xi32>
    %18 = tpu.iota {dimensions = array<i32: 0>} : vector<8x1xi32>
    %c8_i32 = arith.constant 8 : i32
    %c0_i32_4 = arith.constant 0 : i32
    %19 = arith.cmpi eq, %c8_i32, %c0_i32_4 : i32
    %c1_i32_5 = arith.constant 1 : i32
    %20 = arith.select %19, %c1_i32_5, %c8_i32 : i32
    %21 = vector.broadcast %20 : i32 to vector<8x1xi32>
    %22 = arith.remsi %18, %21 : vector<8x1xi32>
    %c0_i32_6 = arith.constant 0 : i32
    %23 = vector.broadcast %c0_i32_6 : i32 to vector<8x1xi32>
    %24 = arith.cmpi ne, %22, %23 : vector<8x1xi32>
    %c0_i32_7 = arith.constant 0 : i32
    %25 = vector.broadcast %c0_i32_7 : i32 to vector<8x1xi32>
    %26 = arith.cmpi slt, %22, %25 : vector<8x1xi32>
    %c0_i32_8 = arith.constant 0 : i32
    %27 = arith.cmpi slt, %20, %c0_i32_8 : i32
    %28 = vector.broadcast %27 : i1 to vector<8x1xi1>
    %29 = vector.broadcast %28 : vector<8x1xi1> to vector<8x1xi1>
    %30 = arith.xori %26, %29 : vector<8x1xi1>
    %31 = arith.andi %30, %24 : vector<8x1xi1>
    %32 = vector.broadcast %20 : i32 to vector<8x1xi32>
    %33 = arith.addi %22, %32 : vector<8x1xi32>
    %34 = arith.select %31, %33, %22 : vector<8x1xi1>, vector<8x1xi32>
    %c15_i32 = arith.constant 15 : i32
    %35 = vector.broadcast %c15_i32 : i32 to vector<1x256xi32>
    %36 = arith.cmpi eq, %17, %35 : vector<1x256xi32>
    %c255_i32 = arith.constant 255 : i32
    %37 = tpu.dynamic_rotate %0 by %c255_i32 dim 1 : vector<8x256xf32>, i32 -> vector<8x256xf32>
    %cst = arith.constant 0x7F800000 : f32
    %38 = vector.shape_cast %36 : vector<1x256xi1> to vector<1x256xi1>
    %39 = vector.broadcast %38 : vector<1x256xi1> to vector<8x256xi1>
    %40 = vector.broadcast %cst : f32 to vector<8x256xf32>
    %41 = arith.select %39, %40, %37 : vector<8x256xi1>, vector<8x256xf32>
    %c0_i32_9 = arith.constant 0 : i32
    %42 = vector.broadcast %c0_i32_9 : i32 to vector<1x256xi32>
    %43 = arith.cmpi eq, %17, %42 : vector<1x256xi32>
    %c1_i32_10 = arith.constant 1 : i32
    %44 = tpu.dynamic_rotate %0 by %c1_i32_10 dim 1 : vector<8x256xf32>, i32 -> vector<8x256xf32>
    %cst_11 = arith.constant 0x7F800000 : f32
    %45 = vector.shape_cast %43 : vector<1x256xi1> to vector<1x256xi1>
    %46 = vector.broadcast %45 : vector<1x256xi1> to vector<8x256xi1>
    %47 = vector.broadcast %cst_11 : f32 to vector<8x256xf32>
    %48 = arith.select %46, %47, %44 : vector<8x256xi1>, vector<8x256xf32>
    %c240_i32 = arith.constant 240 : i32
    %49 = vector.broadcast %c240_i32 : i32 to vector<1x256xi32>
    %50 = arith.cmpi sge, %1, %49 : vector<1x256xi32>
    %c240_i32_12 = arith.constant 240 : i32
    %51 = tpu.dynamic_rotate %0 by %c240_i32_12 dim 1 : vector<8x256xf32>, i32 -> vector<8x256xf32>
    %cst_13 = arith.constant 0x7F800000 : f32
    %52 = vector.shape_cast %50 : vector<1x256xi1> to vector<1x256xi1>
    %53 = vector.broadcast %52 : vector<1x256xi1> to vector<8x256xi1>
    %54 = vector.broadcast %cst_13 : f32 to vector<8x256xf32>
    %55 = arith.select %53, %54, %51 : vector<8x256xi1>, vector<8x256xf32>
    %c16_i32_14 = arith.constant 16 : i32
    %56 = vector.broadcast %c16_i32_14 : i32 to vector<1x256xi32>
    %57 = arith.cmpi slt, %1, %56 : vector<1x256xi32>
    %c16_i32_15 = arith.constant 16 : i32
    %58 = tpu.dynamic_rotate %0 by %c16_i32_15 dim 1 : vector<8x256xf32>, i32 -> vector<8x256xf32>
    %cst_16 = arith.constant 0x7F800000 : f32
    %59 = vector.shape_cast %57 : vector<1x256xi1> to vector<1x256xi1>
    %60 = vector.broadcast %59 : vector<1x256xi1> to vector<8x256xi1>
    %61 = vector.broadcast %cst_16 : f32 to vector<8x256xf32>
    %62 = arith.select %60, %61, %58 : vector<8x256xi1>, vector<8x256xf32>
    %c7_i32 = arith.constant 7 : i32
    %63 = vector.broadcast %c7_i32 : i32 to vector<8x1xi32>
    %64 = arith.cmpi eq, %34, %63 : vector<8x1xi32>
    %c7_i32_17 = arith.constant 7 : i32
    %65 = tpu.dynamic_rotate %0 by %c7_i32_17 dim 0 : vector<8x256xf32>, i32 -> vector<8x256xf32>
    %cst_18 = arith.constant 0x7F800000 : f32
    %66 = vector.shape_cast %64 : vector<8x1xi1> to vector<8x1xi1>
    %67 = vector.broadcast %66 : vector<8x1xi1> to vector<8x256xi1>
    %68 = vector.broadcast %cst_18 : f32 to vector<8x256xf32>
    %69 = arith.select %67, %68, %65 : vector<8x256xi1>, vector<8x256xf32>
    %c0_i32_19 = arith.constant 0 : i32
    %70 = vector.broadcast %c0_i32_19 : i32 to vector<8x1xi32>
    %71 = arith.cmpi eq, %34, %70 : vector<8x1xi32>
    %c1_i32_20 = arith.constant 1 : i32
    %72 = tpu.dynamic_rotate %0 by %c1_i32_20 dim 0 : vector<8x256xf32>, i32 -> vector<8x256xf32>
    %cst_21 = arith.constant 0x7F800000 : f32
    %73 = vector.shape_cast %71 : vector<8x1xi1> to vector<8x1xi1>
    %74 = vector.broadcast %73 : vector<8x1xi1> to vector<8x256xi1>
    %75 = vector.broadcast %cst_21 : f32 to vector<8x256xf32>
    %76 = arith.select %74, %75, %72 : vector<8x256xi1>, vector<8x256xf32>
    %77 = arith.minimumf %41, %48 : vector<8x256xf32>
    %78 = arith.minimumf %55, %62 : vector<8x256xf32>
    %79 = arith.minimumf %77, %78 : vector<8x256xf32>
    %80 = arith.minimumf %69, %76 : vector<8x256xf32>
    %81 = arith.minimumf %80, %0 : vector<8x256xf32>
    %82 = arith.minimumf %79, %81 : vector<8x256xf32>
    %c0_22 = arith.constant 0 : index
    %c0_23 = arith.constant 0 : index
    %83 = vector.load %arg2[%c0_22, %c0_23] : memref<8x256xf32, #tpu.memory_space<vmem>>, vector<8x256xf32>
    tpu.vector_store %arg2[%c0_22, %c0_23], %82 {strides = array<i32>} : memref<8x256xf32, #tpu.memory_space<vmem>>, vector<8x256xf32>,
    return
  }
  func.func @transform_0(%arg0: i32) -> (i32, i32) {
    %c0_i32 = arith.constant 0 : i32
    %c0_i32_0 = arith.constant 0 : i32
    return %arg0, %c0_i32 : i32, i32
  }
  func.func @transform_1(%arg0: i32) -> (i32, i32) {
    %c0_i32 = arith.constant 0 : i32
    %c0_i32_0 = arith.constant 0 : i32
    return %arg0, %c0_i32 : i32, i32
  }
}

</mosaic_0001>

<bundles_post_ra>
// kernel: tpu_custom_call.1
= control target key start
LH: loop header
LB: loop body
LE: loop exit
PB: predicated region body
PF: predicated region fallthrough
CT: control target
= control target key end

     0   :  { %6 = vsyncpa [#allocation3], 0  ;;  %s697_s0 = inlined_call_operand.hbm [shape: f32[48,256], index: 0, kind: input, shape index: {}]   ;;  %s698_s1 = inlined_call_operand.hbm [shape: f32[48,256], index: 1, kind: output, shape index: {}]  }
   0x1   :  { %8 = vsyncpa [#allocation3 + $0x1], 0 }
   0x2   :  { %9 = vsyncpa [#allocation4], 0 }
   0x3   :  { %11 = vsyncpa [#allocation4 + $0x1], 0  ;;  %s530_s6 = smov 0   ;;  %s532_s7 = smov 0  }
   0x4   :  { %s534_s8 = smov 0   ;;  %s536_s9 = smov 0  }
   0x5 LB: > { %s551_s10 = sadd.s32 4294967295, %s514_s9   ;;  %s352_s11 = sadd.s32 4294967294, %s514_s9   ;;  %s514_s9 = sphi %s536_s9, %s715_s9   ;;  %s510_s8 = sphi %s534_s8, %s714_s8   ;;  %s506_s7 = sphi %s532_s7, %s713_s7   ;;  %s502_s6 = sphi %s530_s6, %s712_s6  }
   0x6   : > { %s555_s12 = sadd.s32 1, %s514_s9   ;;  %s24_s13 = sadd.s32 1, %s510_s8 }
   0x7   : > { %s21_s14 = ssub.s32 %s514_s9, %s555_s12  ;;  %p31_p0 = scmp.ne.s32.totalorder %s510_s8, %s506_s7 }
   0x8   : > { %p22_p1 = scmp.eq.s32.totalorder %s21_s14, 0  ;;  %p32_p2 = scmp.eq.s32.totalorder %s514_s9, 0 }
   0x9   : > { %p37_p3 = scmp.ne.s32.totalorder %s506_s7, %s502_s6  ;;  %p38_p4 = scmp.eq.s32.totalorder %s551_s10, 0 }
   0xa   : > { %s567_s15 = scalar_select %p22_p1, %s510_s8, %s24_s13  }
   0xb   : > { %p569_p5 = por %p32_p2, %p31_p0  ;;  %p573_p6 = por %p38_p4, %p37_p3 }
   0xc   : > { %p61_p7 = scmp.eq.s32.totalorder %s551_s10, 5  ;;  %p67_p8 = scmp.eq.s32.totalorder %s352_s11, 5 }
   0xd   : > { %p380_p9 = scmp.lt.s32.totalorder %s514_s9, 6  ;;  %s87_s20 = sand.u32 1, %s510_s8  }
   0xe   : > { %p579_p10 = por %p61_p7, %p31_p0  ;;  %p583_p11 = por %p67_p8, %p37_p3 }
   0xf   : > { %s366_s21 = sshll.u32 %s514_s9, 4  ;;  %s355_s22 = sshll.u32 %s87_s20, 4 }
  0x10   : > { %s96_s25 = scalar_lea.hbm %s697_s0, %s366_s21  ;;  %s91_s27 = scalar_lea.vmem [#allocation2], %s355_s22 }
  0x11   : > { %s98_s26 = sshll.u32 %s96_s25, 4  ;;  %s100_s28 = sshll.u32 %s91_s27, 4  ;;  %s99_s26 = int_to_ptr.hbm [resolvable:$true] %s98_s26  ;;  %s101_s28 = int_to_ptr.vmem [resolvable:$true] %s100_s28 }
  0x12   : > { %p594_p12 = pnand %p380_p9, %p569_p5  ;;  %p358_p13 = scmp.ge.s32.totalorder %s514_s9, 1 }
  0x13   : > { %p105_p0 = scmp.lt.s32.totalorder %s514_s9, 7  ;;  %s88_s30 = scalar_lea.sflag [#allocation3], %s87_s20 }
  0x14   : > { %s418_s2 = sshra.s32 %s99_s26, 4  ;;  %p422_p2 = pneg %p594_p12  ;;  %s419_s2 = int_to_ptr.hbm [resolvable:$true] %s418_s2 }
  0x15   : > { %s420_s3 = scalar_lea.hbm %s419_s2, 16  ;;  %s425_s11 = scalar_lea.hbm %s697_s0, 96 }
  0x16   : > { %p421_p1 = scmp.ne.s32.totalorder %s419_s2, %s420_s3  ;;  %p426_p5 = scmp.lt.s32.totalorder %s419_s2, %s697_s0 }
  0x17   : > { %p427_p7 = scmp.lt.s32.totalorder %s425_s11, %s420_s3 }
  0x18   : > { %p423_p3 = pnand %p422_p2, %p421_p1 }
  0x19   : > { %p428_p8 = por %p427_p7, %p426_p5 }
  0x1a   : > { %p424_p4 = pneg %p423_p3 }
  0x1c   : > { %p429_p9 = pnand %p428_p8, %p424_p4 }
  0x1e   : > { %432 = shalt.err (!%p429_p9)
}
  0x1f   : > { %375 = dma.hbm_to_vmem [thread:$0]  (!%p594_p12), %s99_s26, 256, %s101_s28, %s88_s30  }
  0x20   : > { %p106_p1 = pnand %p358_p13, %p105_p0 }
  0x21   : > { %s615_s16 = sand.u32 (!%p106_p1), 1, %s506_s7  }
  0x22   : > { %109 = sbr.rel (%p106_p1) target bundleno = 183 (0xb7), region = 24  ;;  %s359_s20 = sshll.u32 (!%p106_p1), %s615_s16, 4 }
  0x23   : > { %s112_s21 = scalar_lea.sflag (!%p106_p1), [#allocation3], %s615_s16  ;;  %s115_s22 = scalar_lea.vmem (!%p106_p1), [#allocation2], %s359_s20 }
  0x27   : > { %493 = dma.done.wait (%p573_p6), %s112_s21, 256  }
  0x28   : > { %495 = vsyncadd (%p573_p6), %s112_s21, 4294967040  ;;  %v625_v0 = vld [vmem:[%s115_s22] sm:$0xff]  ;;  %s516_s23 = smov 1   ;;  %s517_s24 = smov 127   ;;  %v136_v1 = vld [vmem:[%s115_s22 + $0x8] sm:$0xff]  ;;  %v137_v2 = vlaneseq }
  0x29   : > { %195 = vrot.lane.b32.xlu1 %v625_v0, %s516_s23  ;;  %180 = vrot.lane.b32.xlu0 %v625_v0, %s517_s24  ;;  %s518_s25 = smov 112   ;;  %s519_s26 = smov 16   ;;  %v239_v11 = vrot.slane %v136_v1, 1  ;;  %v246_v12 = vrot.slane %v136_v1, 7  ;;  %v238_v15 = vrot.slane %v625_v0, 1  ;;  %v245_v16 = vrot.slane %v625_v0, 7 }
  0x2a   : > { %210 = vrot.lane.b32.xlu2 %v625_v0, %s518_s25  ;;  %v138_v3 = vand.u32 127, %v137_v2  ;;  %v165_v6 = vshrl.u32 %v137_v2, 7  ;;  %s367_s17 = sshll.u32 %s551_s10, 4  ;;  %s134_s29 = scalar_lea.vmem [#allocation5], %s359_s20 }
  0x2b   : > { %s277_s28 = scalar_lea.hbm %s698_s1, %s367_s17  ;;  %s279_s30 = sshll.u32 %s134_s29, 4  ;;  %s280_s30 = int_to_ptr.vmem [resolvable:$true] %s279_s30 }
  0x2c   : > { %v139_v8 = vadd.s32 128, %v138_v3  ;;  %v170_v9 = vand.u32 7, %v165_v6  ;;  %v144_v17 = vand.u32 15, %v138_v3  ;;  %vm199_vm2 = vcmp.lt.s32.totalorder %v138_v3, 1  ;;  %s281_s2 = sshll.u32 %s277_s28, 4  ;;  %s266_s3 = scalar_lea.sflag [#allocation4], %s615_s16  ;;  %s282_s2 = int_to_ptr.hbm [resolvable:$true] %s281_s2 }
  0x2d   : > { %vm184_vm3 = vcmp.lt.s32.totalorder %v138_v3, 127  ;;  %vm214_vm4 = vcmp.lt.s32.totalorder %v138_v3, 112  ;;  %vm223_vm10 = vcmp.lt.s32.totalorder %v138_v3, 16  ;;  %s462_s4 = sshra.s32 %s282_s2, 4  ;;  %s468_s14 = scalar_lea.hbm %s698_s1, 96  ;;  %s463_s4 = int_to_ptr.hbm [resolvable:$true] %s462_s4 }
  0x2e   : > { %v151_v10 = vand.u32 15, %v139_v8  ;;  %vm237_vm0 = vcmp.eq.s32.totalorder %v170_v9, 7  ;;  %vm244_vm1 = vcmp.eq.s32.totalorder %v170_v9, 0  ;;  %vm641_vm7 = vcmp.eq.s32.totalorder %v144_v17, 0  ;;  %s464_s5 = scalar_lea.hbm %s463_s4, 16  ;;  %p469_p0 = scmp.lt.s32.totalorder %s463_s4, %s698_s1 }
  0x2f   : > { %v243_v21 = vsel %vm237_vm0, inf, %v239_v11  ;;  %v250_v22 = vsel %vm244_vm1, inf, %v246_v12  ;;  %v242_v25 = vsel %vm237_vm0, inf, %v238_v15  ;;  %v249_v26 = vsel %vm244_vm1, inf, %v245_v16  ;;  %p465_p6 = scmp.ne.s32.totalorder %s463_s4, %s464_s5  ;;  %p470_p2 = scmp.lt.s32.totalorder %s468_s14, %s464_s5 }
  0x30   : > { %vm633_vm5 = vcmp.eq.s32.totalorder %v151_v10, 0  ;;  %vm637_vm6 = vcmp.eq.s32.totalorder %v151_v10, 15  ;;  %vm645_vm8 = vcmp.eq.s32.totalorder %v144_v17, 15  ;;  %vm209_vm9 = vcmp.ge.s32.totalorder %v139_v8, 240 }
  0x31   : > { %197 = vrot.lane.b32.xlu1 %v136_v1, %s516_s23  ;;  %182 = vrot.lane.b32.xlu0 %v136_v1, %s517_s24  ;;  %v258_v32 = vmin.f32 %v243_v21, %v250_v22  ;;  %v257_v35 = vmin.f32 %v242_v25, %v249_v26  ;;  %p466_p12 = pnand %p465_p6, %p579_p10  ;;  %p471_p3 = por %p470_p2, %p469_p0 }
  0x32   : > { %212 = vrot.lane.b32.xlu2 %v136_v1, %s518_s25 }
  0x33   : > { %v260_v45 = vmin.f32 %v258_v32, %v136_v1  ;;  %v259_v50 = vmin.f32 %v257_v35, %v625_v0  ;;  %p467_p13 = pneg %p466_p12 }
  0x35   : > { %p472_p4 = pnand %p471_p3, %p467_p13 }
  0x39   : > { %227 = vrot.lane.b32.xlu1 %v136_v1, %s519_s26  ;;  %225 = vrot.lane.b32.xlu0 %v625_v0, %s519_s26 }
  0x84   : > { %v211_v7 = vpop.permute.xlu2 %210 }
  0x8c   : > { %v213_v18 = vpop.permute.xlu2 %212 }
  0x8d   : > { %v216_v31 = vsel %vm214_vm4, %v213_v18, %v211_v7  ;;  %v215_v40 = vsel %vm214_vm4, %v211_v7, %v213_v18 }
  0x8e   : > { %v222_v41 = vsel %vm209_vm9, inf, %v216_v31 }
  0x9b   : > { %v196_v4 = vpop.permute.xlu1 %195  ;;  %v181_v5 = vpop.permute.xlu0 %180 }
  0xa3   : > { %v198_v13 = vpop.permute.xlu1 %197  ;;  %v183_v14 = vpop.permute.xlu0 %182 }
  0xa4   : > { %v200_v23 = vsel %vm199_vm2, %v196_v4, %v198_v13  ;;  %v186_v24 = vsel %vm184_vm3, %v183_v14, %v181_v5  ;;  %v201_v28 = vsel %vm199_vm2, %v198_v13, %v196_v4  ;;  %v185_v30 = vsel %vm184_vm3, %v181_v5, %v183_v14 }
  0xa5   : > { %v207_v33 = vsel %vm633_vm5, inf, %v200_v23  ;;  %v192_v34 = vsel %vm637_vm6, inf, %v186_v24  ;;  %v206_v36 = vsel %vm641_vm7, inf, %v201_v28  ;;  %v191_v37 = vsel %vm645_vm8, inf, %v185_v30 }
  0xa6   : > { %v252_v44 = vmin.f32 %v192_v34, %v207_v33  ;;  %v251_v48 = vmin.f32 %v191_v37, %v206_v36 }
  0xab   : > { %v228_v38 = vpop.permute.xlu1 %227  ;;  %v226_v39 = vpop.permute.xlu0 %225 }
  0xac   : > { %v229_v42 = vsel %vm223_vm10, %v226_v39, %v228_v38  ;;  %v230_v43 = vsel %vm223_vm10, %v228_v38, %v226_v39 }
  0xad   : > { %v235_v46 = vsel %vm223_vm10, inf, %v230_v43  ;;  %v254_v47 = vmin.f32 %v222_v41, %v229_v42 }
  0xae   : > { %v253_v49 = vmin.f32 %v215_v40, %v235_v46 }
  0xaf   : > { %v256_v51 = vmin.f32 %v252_v44, %v254_v47 }
  0xb0   : > { %v255_v52 = vmin.f32 %v251_v48, %v253_v49 }
  0xb1   : > { %v262_v53 = vmin.f32 %v256_v51, %v260_v45 }
  0xb2   : > { %v261_v54 = vmin.f32 %v255_v52, %v259_v50 }
  0xb3   : > { %264 = vst [vmem:[%s134_s29 + $0x8] sm:$0xff] %v262_v53 }
  0xb4   : > { %263 = vst [vmem:[%s134_s29] sm:$0xff] %v261_v54 }
  0xb5   : > { %475 = shalt.err (!%p472_p4)
}
  0xb6   : > { %370 = dma.vmem_to_hbm [thread:$0]  (%p579_p10), %s280_s30, 256, %s282_s2, %s266_s3  }
  0xb7 PF: > { %p381_p5 = scmp.ge.s32.totalorder %s514_s9, 2  ;;  %s293_s16 = sand.u32 1, %s502_s6  }
  0xb8   : > { %s294_s22 = scalar_lea.sflag [#allocation4], %s293_s16 }
  0xb9   : > { %p377_p7 = pnand %p381_p5, %p583_p11 }
  0xbb   : > { %p378_p8 = pneg %p377_p7 }
  0xbd   : > { %497 = dma.done.wait (%p378_p8), %s294_s22, 256  }
  0xbe   : > { %499 = vsyncadd (%p378_p8), %s294_s22, 4294967040  ;;  %p14_p9 = scmp.ge.s32.totalorder %s555_s12, 8   ;;  %s712_s6 = smov %s506_s7 }
  0xbf   : > { %s713_s7 = smov %s510_s8  ;;  %s714_s8 = smov %s567_s15 }
  0xc0   : > { %s715_s9 = smov %s555_s12  ;;  %16 = sbr.rel (!%p14_p9) target bundleno = 5 (0x5), region = 69 }
  0xc5   :  { %300 = vsyncpa [#allocation3], 1 }
  0xc6   :  { %302 = vsyncpa [#allocation3 + $0x1], 1 }
  0xc7   :  { %303 = vsyncpa [#allocation4], 1 }
  0xc8   :  { %305 = vsyncpa [#allocation4 + $0x1], 1 }

</bundles_post_ra>
